<compile_context>
chip_gen: v7x
topology: tpu7x:2x2x1
jax: 0.10.0
libtpu: 0.0.40
codegen_flags: <defaults>
</compile_context>

<pallas_src>
import functools

import jax
import jax.numpy as jnp
from jax import lax
from jax.experimental import pallas as pl
from jax.experimental.pallas import tpu as pltpu


def convt_stats_kernel(xp_ref, w9_ref, yt_ref, psum_ref, pssq_ref):
    """Fused 4-phase ConvTranspose2d(k=4,s=2,p=1) for one batch element.

    xp_ref  : (1, H+2, W+2, Cin) bf16  zero-padded NHWC input
    w9_ref  : (4*Cout, 9*Cin)    bf16  merged zero-padded weight slab,
                                       row = (ry*2+rx)*Cout + co, col = (dy*3+dx)*Cin + ci
    yt_ref  : (1, 4*Cout, H*W)   bf16  transposed conv output (lane-dense),
                                       yt[p*Cout+co, qy*W+qx] = conv[co, 2qy+ry, 2qx+rx]
    psum_ref, pssq_ref : (1, 8, 4*Cout) f32  per-batch partial sum / sum-of-squares
                                       (8 identical sublane rows; row 0 is consumed)
    """
    Hp, Wp, Cin = xp_ref.shape[1], xp_ref.shape[2], xp_ref.shape[3]
    H, W = Hp - 2, Wp - 2

    xp = xp_ref[0]                                            # (H+2, W+2, Cin)

    # Merged im2col over the 9 spatial offsets; K = 9*Cin.
    # TODO(synk): for real G_block shapes add a qy row-block grid axis (with
    # per-(n, row-block) partial stats) so patch + y blocks stay well inside
    # v7x's 32 MiB scoped VMEM and the megacore gets more parallel grid points.
    patch = jnp.concatenate(
        [xp[dy:dy + H, dx:dx + W, :] for dy in range(3) for dx in range(3)],
        axis=-1)                                              # (H, W, 9*Cin)
    patch = patch.reshape(H * W, 9 * Cin)                     # (H*W, 9*Cin)

    # One MXU dot, transposed output so H*W sits on the lane dim (lane-dense store).
    yt = lax.dot_general(
        w9_ref[...], patch,
        dimension_numbers=(((1,), (1,)), ((), ())),
        preferred_element_type=jnp.float32)                   # (4*Cout, H*W) f32

    yt_bf = yt.astype(yt_ref.dtype)
    yt_ref[0] = yt_bf

    # BatchNorm partial stats from the bf16-rounded values that get normalized,
    # computed as ones-matmuls (MXU has slack) instead of cross-sublane XLU sums.
    yr = yt_bf.astype(jnp.float32)
    ones = jnp.ones((8, H * W), jnp.float32)
    psum_ref[0] = lax.dot_general(
        ones, yr, dimension_numbers=(((1,), (1,)), ((), ())),
        preferred_element_type=jnp.float32)                   # (8, 4*Cout)
    pssq_ref[0] = lax.dot_general(
        ones, yr * yr, dimension_numbers=(((1,), (1,)), ((), ())),
        preferred_element_type=jnp.float32)


def bn_relu_nchw_kernel(y_ref, scale_ref, shift_ref, o_ref):
    """o = max(y*scale + shift, 0) on NCHW-flattened data (lane-dense H2*W2)."""
    yv = y_ref[0].astype(jnp.float32)                         # (Cout, H2*W2)
    o_ref[0] = jnp.maximum(yv * scale_ref[...] + shift_ref[...], 0.0)


@functools.partial(jax.jit, static_argnames=("eps",))
def g_block_forward(x_nchw, w, gamma, beta, eps=0.8):
    """x_nchw: (N, Cin, H, W) f32; w: (Cin, Cout, 4, 4); gamma/beta: (Cout,).

    Returns (N, Cout, 2H, 2W) f32 (same semantics as the PyTorch G_block).
    """
    N, Cin, H, W = x_nchw.shape
    Cout = w.shape[1]
    H2, W2 = 2 * H, 2 * W
    L = H2 * W2

    # ---- input prep (tiny tensor): NCHW -> NHWC, pad by 1, cast to bf16 ------
    x = jnp.transpose(x_nchw, (0, 2, 3, 1)).astype(jnp.bfloat16)
    xp = jnp.pad(x, ((0, 0), (1, 1), (1, 1), (0, 0)))          # (N, H+2, W+2, Cin)

    # ---- merged zero-padded weight slab (4*Cout, 9*Cin) ----------------------
    # Phase decomposition: output pixel (2qy+ry, 2qx+rx) is a stride-1 2x2 conv of
    # the padded input at offsets (dy,dx) = (ry+a, rx+b), a,b in {0,1}, with
    # spatially flipped taps.  ws[p, (2a+b)*Cin+ci, co] is the validated per-phase
    # slab; it is scattered into the 9-offset slab used by the single merged dot.
    wf = w[:, :, ::-1, ::-1]                                   # (Cin, Cout, 4, 4)
    ws = wf.reshape(Cin, Cout, 2, 2, 2, 2).transpose(3, 5, 2, 4, 0, 1)
    ws = ws.reshape(4, 4 * Cin, Cout)                          # [p, (2a+b)*Cin+ci, co]
    w9 = jnp.zeros((4 * Cout, 9 * Cin), w.dtype)
    for ry in range(2):
        for rx in range(2):
            p = 2 * ry + rx
            for a in range(2):
                for b in range(2):
                    dy, dx = ry + a, rx + b
                    blk = ws[p, (2 * a + b) * Cin:(2 * a + b + 1) * Cin, :]  # (Cin, Cout)
                    w9 = w9.at[p * Cout:(p + 1) * Cout,
                               (3 * dy + dx) * Cin:(3 * dy + dx + 1) * Cin].set(blk.T)
    w9 = w9.astype(jnp.bfloat16)

    # ---- kernel 1: single-dot conv-transpose + per-batch partial stats -------
    yt, psum, pssq = pl.pallas_call(
        convt_stats_kernel,
        out_shape=(
            jax.ShapeDtypeStruct((N, 4 * Cout, H * W), jnp.bfloat16),
            jax.ShapeDtypeStruct((N, 8, 4 * Cout), jnp.float32),
            jax.ShapeDtypeStruct((N, 8, 4 * Cout), jnp.float32),
        ),
        grid=(N,),                        # N=2: even parallel grid -> both v7x TCs
        in_specs=[
            pl.BlockSpec((1, H + 2, W + 2, Cin), lambda n: (n, 0, 0, 0)),
            pl.BlockSpec((4 * Cout, 9 * Cin), lambda n: (0, 0)),
        ],
        out_specs=(
            pl.BlockSpec((1, 4 * Cout, H * W), lambda n: (n, 0, 0)),
            pl.BlockSpec((1, 8, 4 * Cout), lambda n: (n, 0, 0)),
            pl.BlockSpec((1, 8, 4 * Cout), lambda n: (n, 0, 0)),
        ),
        compiler_params=pltpu.CompilerParams(
            dimension_semantics=("parallel",),
            vmem_limit_bytes=32 * 1024 * 1024),
    )(xp, w9)

    # ---- fold batch statistics into per-channel scale/shift (tiny XLA glue) --
    # Training-mode BatchNorm2d: biased variance over (N, H2, W2), eps = 0.8.
    count = float(N * H2 * W2)
    s = jnp.sum(psum[:, 0, :].reshape(N, 4, Cout), axis=(0, 1))
    q = jnp.sum(pssq[:, 0, :].reshape(N, 4, Cout), axis=(0, 1))
    mean = s / count
    var = jnp.maximum(q / count - mean * mean, 0.0)  # guard E[y^2]-E[y]^2 cancellation
    # TODO(synk): switch to centered (Welford-style) partials if eps is ever small.
    scale = gamma * jax.lax.rsqrt(var + eps)
    shift = beta - mean * scale
    scale2 = scale[:, None].astype(jnp.float32)      # (Cout, 1)
    shift2 = shift[:, None].astype(jnp.float32)

    # ---- phase de-interleave + ->NCHW on the bf16 y (half the old bytes) -----
    # TODO(synk): fold this pass into bn_relu_nchw_kernel via strided/interleaved
    # in-kernel stores to also drop this bf16 round trip.
    z = yt.reshape(N, 2, 2, Cout, H, W)              # (n, ry, rx, co, qy, qx)
    y_nchw = z.transpose(0, 3, 4, 1, 5, 2).reshape(N, Cout, L)   # (n, co, oy*W2+ox)

    # ---- kernel 2: BN scale/shift + ReLU, writes the FINAL f32 NCHW tensor ---
    out_flat = pl.pallas_call(
        bn_relu_nchw_kernel,
        out_shape=jax.ShapeDtypeStruct((N, Cout, L), jnp.float32),
        grid=(N,),
        in_specs=[
            pl.BlockSpec((1, Cout, L), lambda n: (n, 0, 0)),
            pl.BlockSpec((Cout, 1), lambda n: (0, 0)),
            pl.BlockSpec((Cout, 1), lambda n: (0, 0)),
        ],
        out_specs=pl.BlockSpec((1, Cout, L), lambda n: (n, 0, 0)),
        compiler_params=pltpu.CompilerParams(
            dimension_semantics=("parallel",),
            vmem_limit_bytes=32 * 1024 * 1024),
    )(y_nchw, scale2, shift2)

    return out_flat.reshape(N, Cout, H2, W2)


def reference(x_nchw, w, gamma, beta, eps=0.8):
    """Pure-JAX (XLA conv) reference of the same forward pass, NCHW, f32."""
    wf = jnp.transpose(w, (1, 0, 2, 3))[:, :, ::-1, ::-1]  # (Cout, Cin, 4, 4)
    y = jax.lax.conv_general_dilated(
        x_nchw, wf, window_strides=(1, 1), padding=((2, 2), (2, 2)),
        lhs_dilation=(2, 2), rhs_dilation=(1, 1),
        dimension_numbers=("NCHW", "OIHW", "NCHW"))
    mean = jnp.mean(y, axis=(0, 2, 3), keepdims=True)
    var = jnp.var(y, axis=(0, 2, 3), keepdims=True)  # biased, training-mode BN
    yn = (y - mean) * jax.lax.rsqrt(var + eps)
    yn = yn * gamma[None, :, None, None] + beta[None, :, None, None]
    return jnp.maximum(yn, 0.0)


if __name__ == "__main__":
    N, Cin, Cout, H, W = 2, 4, 8, 16, 16

    key = jax.random.PRNGKey(0)
    k1, k2, k3, k4 = jax.random.split(key, 4)
    x = jax.random.normal(k1, (N, Cin, H, W), jnp.float32)
    w = 0.1 * jax.random.normal(k2, (Cin, Cout, 4, 4), jnp.float32)
    gamma = 1.0 + 0.1 * jax.random.normal(k3, (Cout,), jnp.float32)
    beta = 0.1 * jax.random.normal(k4, (Cout,), jnp.float32)

    out = g_block_forward(x, w, gamma, beta)
    out = jax.block_until_ready(out)
    assert out.shape == (N, Cout, 2 * H, 2 * W), out.shape

    ref = reference(x, w, gamma, beta)
    # bf16 MXU operands / bf16 conv intermediate -> compare with loose tolerance.
    if not bool(jnp.allclose(out, ref, atol=3e-2, rtol=3e-2)):
        raise AssertionError(
            f"mismatch vs reference, max abs diff = "
            f"{float(jnp.max(jnp.abs(out - ref)))}")

    print("KERNEL_OK")
</pallas_src>

<mosaic_0001>
module attributes {stable_mosaic.version = 11 : i64} {
  func.func @convt_stats_kernel(%arg0: i32, %arg1: memref<1x18x18x4xbf16, #tpu.memory_space<vmem>>, %arg2: memref<32x36xbf16, #tpu.memory_space<vmem>>, %arg3: memref<1x32x256xbf16, #tpu.memory_space<vmem>>, %arg4: memref<1x8x32xf32, #tpu.memory_space<vmem>>, %arg5: memref<1x8x32xf32, #tpu.memory_space<vmem>>) attributes {dimension_semantics = [#tpu.dimension_semantics<parallel>], iteration_bounds = array<i64: 2>, scalar_prefetch = 0 : i64, scratch_operands = 0 : i64, tpu.core_type = #tpu.core_type<tc>, window_params = [{transform_indices = @transform_0, window_bounds = array<i64: 1, 18, 18, 4>}, {pipeline_mode = #tpu.pipeline_mode<synchronous>, transform_indices = @transform_1, window_bounds = array<i64: 32, 36>}, {transform_indices = @transform_2, window_bounds = array<i64: 1, 32, 256>}, {transform_indices = @transform_3, window_bounds = array<i64: 1, 8, 32>}, {transform_indices = @transform_4, window_bounds = array<i64: 1, 8, 32>}]} {
    %c0 = arith.constant 0 : index
    %c0_0 = arith.constant 0 : index
    %c0_1 = arith.constant 0 : index
    %c0_2 = arith.constant 0 : index
    %0 = vector.load %arg1[%c0, %c0_0, %c0_1, %c0_2] : memref<1x18x18x4xbf16, #tpu.memory_space<vmem>>, vector<1x18x18x4xbf16>
    %1 = vector.shape_cast %0 : vector<1x18x18x4xbf16> to vector<18x18x4xbf16>
    %2 = vector.extract_strided_slice %1 {offsets = [0, 0, 0], sizes = [16, 16, 4], strides = [1, 1, 1]} : vector<18x18x4xbf16> to vector<16x16x4xbf16>
    %3 = vector.extract_strided_slice %1 {offsets = [0, 1, 0], sizes = [16, 16, 4], strides = [1, 1, 1]} : vector<18x18x4xbf16> to vector<16x16x4xbf16>
    %4 = vector.extract_strided_slice %1 {offsets = [0, 2, 0], sizes = [16, 16, 4], strides = [1, 1, 1]} : vector<18x18x4xbf16> to vector<16x16x4xbf16>
    %5 = vector.extract_strided_slice %1 {offsets = [1, 0, 0], sizes = [16, 16, 4], strides = [1, 1, 1]} : vector<18x18x4xbf16> to vector<16x16x4xbf16>
    %6 = vector.extract_strided_slice %1 {offsets = [1, 1, 0], sizes = [16, 16, 4], strides = [1, 1, 1]} : vector<18x18x4xbf16> to vector<16x16x4xbf16>
    %7 = vector.extract_strided_slice %1 {offsets = [1, 2, 0], sizes = [16, 16, 4], strides = [1, 1, 1]} : vector<18x18x4xbf16> to vector<16x16x4xbf16>
    %8 = vector.extract_strided_slice %1 {offsets = [2, 0, 0], sizes = [16, 16, 4], strides = [1, 1, 1]} : vector<18x18x4xbf16> to vector<16x16x4xbf16>
    %9 = vector.extract_strided_slice %1 {offsets = [2, 1, 0], sizes = [16, 16, 4], strides = [1, 1, 1]} : vector<18x18x4xbf16> to vector<16x16x4xbf16>
    %10 = vector.extract_strided_slice %1 {offsets = [2, 2, 0], sizes = [16, 16, 4], strides = [1, 1, 1]} : vector<18x18x4xbf16> to vector<16x16x4xbf16>
    %11 = tpu.concatenate %2, %3, %4, %5, %6, %7, %8, %9, %10 in 2 : vector<16x16x4xbf16>, vector<16x16x4xbf16>, vector<16x16x4xbf16>, vector<16x16x4xbf16>, vector<16x16x4xbf16>, vector<16x16x4xbf16>, vector<16x16x4xbf16>, vector<16x16x4xbf16>, vector<16x16x4xbf16> -> vector<16x16x36xbf16>
    %12 = vector.shape_cast %11 : vector<16x16x36xbf16> to vector<256x36xbf16>
    %c0_3 = arith.constant 0 : index
    %c0_4 = arith.constant 0 : index
    %13 = vector.load %arg2[%c0_3, %c0_4] : memref<32x36xbf16, #tpu.memory_space<vmem>>, vector<32x36xbf16>
    %cst = arith.constant dense<0.000000e+00> : vector<32x256xf32>
    %14 = tpu.matmul %13, %12, %cst {dimension_numbers = #tpu.dot_dimension_numbers<[1], [1], [0], [0], [0, 0, 1, 0], [], []>} : vector<32x36xbf16>, vector<256x36xbf16>, vector<32x256xf32> -> vector<32x256xf32>
    %15 = arith.truncf %14 : vector<32x256xf32> to vector<32x256xbf16>
    %c0_5 = arith.constant 0 : index
    %c0_6 = arith.constant 0 : index
    %c0_7 = arith.constant 0 : index
    %16 = vector.load %arg3[%c0_5, %c0_6, %c0_7] : memref<1x32x256xbf16, #tpu.memory_space<vmem>>, vector<1x32x256xbf16>
    %17 = vector.shape_cast %16 : vector<1x32x256xbf16> to vector<32x256xbf16>
    %18 = vector.shape_cast %15 : vector<32x256xbf16> to vector<1x32x256xbf16>
    tpu.vector_store %arg3[%c0_5, %c0_6, %c0_7], %18 {strides = array<i32>} : memref<1x32x256xbf16, #tpu.memory_space<vmem>>, vector<1x32x256xbf16>,
    %19 = arith.extf %15 : vector<32x256xbf16> to vector<32x256xf32>
    %cst_8 = arith.constant 1.000000e+00 : f32
    %20 = vector.broadcast %cst_8 : f32 to vector<8x256xf32>
    %cst_9 = arith.constant dense<0.000000e+00> : vector<8x32xf32>
    %21 = tpu.matmul %20, %19, %cst_9 {dimension_numbers = #tpu.dot_dimension_numbers<[1], [1], [0], [0], [0, 0, 1, 0], [], []>} : vector<8x256xf32>, vector<32x256xf32>, vector<8x32xf32> -> vector<8x32xf32>
    %c0_10 = arith.constant 0 : index
    %c0_11 = arith.constant 0 : index
    %c0_12 = arith.constant 0 : index
    %22 = vector.load %arg4[%c0_10, %c0_11, %c0_12] : memref<1x8x32xf32, #tpu.memory_space<vmem>>, vector<1x8x32xf32>
    %23 = vector.shape_cast %22 : vector<1x8x32xf32> to vector<8x32xf32>
    %24 = vector.shape_cast %21 : vector<8x32xf32> to vector<1x8x32xf32>
    tpu.vector_store %arg4[%c0_10, %c0_11, %c0_12], %24 {strides = array<i32>} : memref<1x8x32xf32, #tpu.memory_space<vmem>>, vector<1x8x32xf32>,
    %25 = arith.mulf %19, %19 : vector<32x256xf32>
    %cst_13 = arith.constant dense<0.000000e+00> : vector<8x32xf32>
    %26 = tpu.matmul %20, %25, %cst_13 {dimension_numbers = #tpu.dot_dimension_numbers<[1], [1], [0], [0], [0, 0, 1, 0], [], []>} : vector<8x256xf32>, vector<32x256xf32>, vector<8x32xf32> -> vector<8x32xf32>
    %c0_14 = arith.constant 0 : index
    %c0_15 = arith.constant 0 : index
    %c0_16 = arith.constant 0 : index
    %27 = vector.load %arg5[%c0_14, %c0_15, %c0_16] : memref<1x8x32xf32, #tpu.memory_space<vmem>>, vector<1x8x32xf32>
    %28 = vector.shape_cast %27 : vector<1x8x32xf32> to vector<8x32xf32>
    %29 = vector.shape_cast %26 : vector<8x32xf32> to vector<1x8x32xf32>
    tpu.vector_store %arg5[%c0_14, %c0_15, %c0_16], %29 {strides = array<i32>} : memref<1x8x32xf32, #tpu.memory_space<vmem>>, vector<1x8x32xf32>,
    return
  }
  func.func @transform_0(%arg0: i32) -> (i32, i32, i32, i32) {
    %c0_i32 = arith.constant 0 : i32
    %c0_i32_0 = arith.constant 0 : i32
    %c0_i32_1 = arith.constant 0 : i32
    %c0_i32_2 = arith.constant 0 : i32
    return %arg0, %c0_i32, %c0_i32_0, %c0_i32_1 : i32, i32, i32, i32
  }
  func.func @transform_1(%arg0: i32) -> (i32, i32) {
    %c0_i32 = arith.constant 0 : i32
    %c0_i32_0 = arith.constant 0 : i32
    %c0_i32_1 = arith.constant 0 : i32
    return %c0_i32, %c0_i32_0 : i32, i32
  }
  func.func @transform_2(%arg0: i32) -> (i32, i32, i32) {
    %c0_i32 = arith.constant 0 : i32
    %c0_i32_0 = arith.constant 0 : i32
    %c0_i32_1 = arith.constant 0 : i32
    return %arg0, %c0_i32, %c0_i32_0 : i32, i32, i32
  }
  func.func @transform_3(%arg0: i32) -> (i32, i32, i32) {
    %c0_i32 = arith.constant 0 : i32
    %c0_i32_0 = arith.constant 0 : i32
    %c0_i32_1 = arith.constant 0 : i32
    return %arg0, %c0_i32, %c0_i32_0 : i32, i32, i32
  }
  func.func @transform_4(%arg0: i32) -> (i32, i32, i32) {
    %c0_i32 = arith.constant 0 : i32
    %c0_i32_0 = arith.constant 0 : i32
    %c0_i32_1 = arith.constant 0 : i32
    return %arg0, %c0_i32, %c0_i32_0 : i32, i32, i32
  }
}

module attributes {stable_mosaic.version = 11 : i64} {
  func.func @bn_relu_nchw_kernel(%arg0: i32, %arg1: memref<1x8x1024xbf16, #tpu.memory_space<vmem>>, %arg2: memref<8x1xf32, #tpu.memory_space<vmem>>, %arg3: memref<8x1xf32, #tpu.memory_space<vmem>>, %arg4: memref<1x8x1024xf32, #tpu.memory_space<vmem>>) attributes {dimension_semantics = [#tpu.dimension_semantics<parallel>], iteration_bounds = array<i64: 2>, scalar_prefetch = 0 : i64, scratch_operands = 0 : i64, tpu.core_type = #tpu.core_type<tc>, window_params = [{transform_indices = @transform_0, window_bounds = array<i64: 1, 8, 1024>}, {pipeline_mode = #tpu.pipeline_mode<synchronous>, transform_indices = @transform_1, window_bounds = array<i64: 8, 1>}, {pipeline_mode = #tpu.pipeline_mode<synchronous>, transform_indices = @transform_2, window_bounds = array<i64: 8, 1>}, {transform_indices = @transform_3, window_bounds = array<i64: 1, 8, 1024>}]} {
    %c0 = arith.constant 0 : index
    %c0_0 = arith.constant 0 : index
    %c0_1 = arith.constant 0 : index
    %0 = vector.load %arg1[%c0, %c0_0, %c0_1] : memref<1x8x1024xbf16, #tpu.memory_space<vmem>>, vector<1x8x1024xbf16>
    %1 = vector.shape_cast %0 : vector<1x8x1024xbf16> to vector<8x1024xbf16>
    %2 = arith.extf %1 : vector<8x1024xbf16> to vector<8x1024xf32>
    %c0_2 = arith.constant 0 : index
    %c0_3 = arith.constant 0 : index
    %3 = vector.load %arg2[%c0_2, %c0_3] : memref<8x1xf32, #tpu.memory_space<vmem>>, vector<8x1xf32>
    %4 = vector.broadcast %3 : vector<8x1xf32> to vector<8x1024xf32>
    %5 = arith.mulf %2, %4 : vector<8x1024xf32>
    %c0_4 = arith.constant 0 : index
    %c0_5 = arith.constant 0 : index
    %6 = vector.load %arg3[%c0_4, %c0_5] : memref<8x1xf32, #tpu.memory_space<vmem>>, vector<8x1xf32>
    %7 = vector.broadcast %6 : vector<8x1xf32> to vector<8x1024xf32>
    %8 = arith.addf %5, %7 : vector<8x1024xf32>
    %cst = arith.constant 0.000000e+00 : f32
    %9 = vector.broadcast %cst : f32 to vector<8x1024xf32>
    %10 = arith.maximumf %8, %9 : vector<8x1024xf32>
    %c0_6 = arith.constant 0 : index
    %c0_7 = arith.constant 0 : index
    %c0_8 = arith.constant 0 : index
    %11 = vector.load %arg4[%c0_6, %c0_7, %c0_8] : memref<1x8x1024xf32, #tpu.memory_space<vmem>>, vector<1x8x1024xf32>
    %12 = vector.shape_cast %11 : vector<1x8x1024xf32> to vector<8x1024xf32>
    %13 = vector.shape_cast %10 : vector<8x1024xf32> to vector<1x8x1024xf32>
    tpu.vector_store %arg4[%c0_6, %c0_7, %c0_8], %13 {strides = array<i32>} : memref<1x8x1024xf32, #tpu.memory_space<vmem>>, vector<1x8x1024xf32>,
    return
  }
  func.func @transform_0(%arg0: i32) -> (i32, i32, i32) {
    %c0_i32 = arith.constant 0 : i32
    %c0_i32_0 = arith.constant 0 : i32
    %c0_i32_1 = arith.constant 0 : i32
    return %arg0, %c0_i32, %c0_i32_0 : i32, i32, i32
  }
  func.func @transform_1(%arg0: i32) -> (i32, i32) {
    %c0_i32 = arith.constant 0 : i32
    %c0_i32_0 = arith.constant 0 : i32
    %c0_i32_1 = arith.constant 0 : i32
    return %c0_i32, %c0_i32_0 : i32, i32
  }
  func.func @transform_2(%arg0: i32) -> (i32, i32) {
    %c0_i32 = arith.constant 0 : i32
    %c0_i32_0 = arith.constant 0 : i32
    %c0_i32_1 = arith.constant 0 : i32
    return %c0_i32, %c0_i32_0 : i32, i32
  }
  func.func @transform_3(%arg0: i32) -> (i32, i32, i32) {
    %c0_i32 = arith.constant 0 : i32
    %c0_i32_0 = arith.constant 0 : i32
    %c0_i32_1 = arith.constant 0 : i32
    return %arg0, %c0_i32, %c0_i32_0 : i32, i32, i32
  }
}

</mosaic_0001>

<bundles_post_ra>
// kernel: g_block_forward.3
= control target key start
LH: loop header
LB: loop body
LE: loop exit
PB: predicated region body
PF: predicated region fallthrough
CT: control target
= control target key end

     0   :  { %s334_s12 = smov 0   ;;  %s361_s0 = inlined_call_operand.vmem [shape: bf16[2,8,1024], index: 0, kind: input, shape index: {}]   ;;  %s362_s1 = inlined_call_operand.vmem [shape: f32[8,1], index: 1, kind: input, shape index: {}]   ;;  %s363_s2 = inlined_call_operand.vmem [shape: f32[8,1], index: 2, kind: input, shape index: {}]   ;;  %s364_s3 = inlined_call_operand.vmem [shape: f32[2,8,1024], index: 3, kind: output, shape index: {}]  }
   0x1 LB: > { %s282_s13 = sadd.s32 4294967295, %s311_s12   ;;  %p286_p0 = scmp.ge.s32.totalorder %s311_s12, 1  ;;  %s311_s12 = sphi %s334_s12, %s13_s12  }
   0x2   : > { %p137_p1 = scmp.lt.s32.totalorder %s311_s12, 3 }
   0x4   : > { %p138_p2 = pnand %p286_p0, %p137_p1 }
   0x5   : > { %v183_v0 = vld [vmem:[%s362_s1] sm:$0xff] (!%p138_p2)  ;;  %v313_v1 = vmov (!%p138_p2), 0   ;;  %p161_p3 = scmp.lt.s32.totalorder (!%p138_p2), %s282_s13, 1 }
   0x6   : > { %141 = sbr.rel (%p138_p2) target bundleno = 147 (0x93), region = 32  ;;  %304 = vset.pattern.permute.xlu0 (!%p138_p2), %v313_v1  ;;  %v197_v2 = vld [vmem:[%s363_s2] sm:$0xff] (!%p138_p2) }
   0x7   : > { %186 = vperm.xlu0 (!%p138_p2), %304, %v183_v0  }
   0xb   : > { %200 = vperm.xlu0 (!%p138_p2), %304, %v197_v2  }
   0xd   : > { %s366_s13 = smov (!%p161_p3, %s282_s13), 1 }
   0xe   : > { %s293_s18 = sshll.u32 %s366_s13, 5  ;;  %s294_s22 = sshll.u32 %s366_s13, 6 }
   0xf   : > { %s165_s21 = scalar_lea.vmem %s361_s0, %s293_s18  ;;  %s170_s25 = scalar_lea.vmem %s364_s3, %s294_s22 }
  0x10   : > { %v171_v3 = vld [vmem:[%s165_s21] sm:$0xff]  ;;  %v172_v4 = vld [vmem:[%s165_s21 + $0x8] sm:$0xff]  ;;  %v173_v5 = vld [vmem:[%s165_s21 + $0x10] sm:$0xff] }
  0x11   : > { %v174_v6 = vld [vmem:[%s165_s21 + $0x18] sm:$0xff]  ;;  %v175_v7 = vunpack.c.l.bf16 %v171_v3  ;;  %v176_v8 = vunpack.c.h.bf16 %v171_v3  ;;  %v177_v9 = vunpack.c.l.bf16 %v172_v4  ;;  %v178_v10 = vunpack.c.h.bf16 %v172_v4 }
  0x12   : > { %v179_v12 = vunpack.c.l.bf16 %v173_v5  ;;  %v180_v13 = vunpack.c.h.bf16 %v173_v5  ;;  %v181_v14 = vunpack.c.l.bf16 %v174_v6  ;;  %v182_v15 = vunpack.c.h.bf16 %v174_v6 }
  0x86   : > { %v187_v11 = vpop.permute.xlu0 %186 }
  0x87   : > { %v189_v16 = vmul.f32 %v187_v11, %v175_v7  ;;  %v190_v17 = vmul.f32 %v187_v11, %v176_v8  ;;  %v191_v18 = vmul.f32 %v187_v11, %v177_v9  ;;  %v192_v19 = vmul.f32 %v187_v11, %v178_v10 }
  0x88   : > { %v193_v21 = vmul.f32 %v187_v11, %v179_v12  ;;  %v194_v22 = vmul.f32 %v187_v11, %v180_v13  ;;  %v195_v23 = vmul.f32 %v187_v11, %v181_v14  ;;  %v196_v24 = vmul.f32 %v187_v11, %v182_v15 }
  0x8a   : > { %v201_v20 = vpop.permute.xlu0 %200 }
  0x8b   : > { %v203_v25 = vadd.f32 %v201_v20, %v189_v16  ;;  %v204_v26 = vadd.f32 %v201_v20, %v190_v17  ;;  %v205_v27 = vadd.f32 %v201_v20, %v191_v18  ;;  %v206_v28 = vadd.f32 %v201_v20, %v192_v19 }
  0x8c   : > { %v207_v29 = vadd.f32 %v201_v20, %v193_v21  ;;  %v208_v30 = vadd.f32 %v201_v20, %v194_v22  ;;  %v209_v31 = vadd.f32 %v201_v20, %v195_v23  ;;  %v210_v32 = vadd.f32 %v201_v20, %v196_v24 }
  0x8d   : > { %v211_v33 = vmax.f32 %v203_v25, 0.0  ;;  %v212_v34 = vmax.f32 %v204_v26, 0.0  ;;  %v213_v35 = vmax.f32 %v205_v27, 0.0  ;;  %v214_v36 = vmax.f32 %v206_v28, 0.0 }
  0x8e   : > { %v215_v37 = vmax.f32 %v207_v29, 0.0  ;;  %v216_v38 = vmax.f32 %v208_v30, 0.0  ;;  %v217_v39 = vmax.f32 %v209_v31, 0.0  ;;  %v218_v40 = vmax.f32 %v210_v32, 0.0 }
  0x8f   : > { %219 = vst [vmem:[%s170_s25] sm:$0xff] %v211_v33  ;;  %220 = vst [vmem:[%s170_s25 + $0x8] sm:$0xff] %v212_v34 }
  0x90   : > { %221 = vst [vmem:[%s170_s25 + $0x10] sm:$0xff] %v213_v35  ;;  %222 = vst [vmem:[%s170_s25 + $0x18] sm:$0xff] %v214_v36 }
  0x91   : > { %223 = vst [vmem:[%s170_s25 + $0x20] sm:$0xff] %v215_v37  ;;  %224 = vst [vmem:[%s170_s25 + $0x28] sm:$0xff] %v216_v38 }
  0x92   : > { %225 = vst [vmem:[%s170_s25 + $0x30] sm:$0xff] %v217_v39  ;;  %226 = vst [vmem:[%s170_s25 + $0x38] sm:$0xff] %v218_v40 }
  0x93 PF: > { %s13_s12 = sadd.s32 1, %s311_s12  }
  0x94   : > { %p10_p4 = scmp.ge.s32.totalorder %s13_s12, 4  }
  0x96   :  { %12 = sbr.rel (!%p10_p4) target bundleno = 1 (0x1), region = 62 }

// kernel: g_block_forward.2
= control target key start
LH: loop header
LB: loop body
LE: loop exit
PB: predicated region body
PF: predicated region fallthrough
CT: control target
= control target key end

     0   :  { %s1823_s15 = smov 0   ;;  %s2434_s0 = inlined_call_operand.vmem [shape: bf16[2,18,18,4], index: 0, kind: input, shape index: {}]   ;;  %s2435_s1 = inlined_call_operand.vmem [shape: bf16[32,36], index: 1, kind: input, shape index: {}]   ;;  %s2436_s2 = inlined_call_operand.vmem [shape: bf16[2,32,256], index: 2, kind: output, shape index: {0}]   ;;  %s2437_s3 = inlined_call_operand.vmem [shape: f32[2,8,32], index: 3, kind: output, shape index: {1}]   ;;  %s2438_s4 = inlined_call_operand.vmem [shape: f32[2,8,32], index: 4, kind: output, shape index: {2}]  }
   0x1 LB: > { %s1619_s16 = sadd.s32 4294967295, %s1787_s15   ;;  %p1623_p0 = scmp.ge.s32.totalorder %s1787_s15, 1  ;;  %s1787_s15 = sphi %s1823_s15, %s15_s15  }
   0x2   : > { %p167_p1 = scmp.lt.s32.totalorder %s1787_s15, 3 }
   0x4   : > { %p168_p2 = pnand %p1623_p0, %p167_p1 }
   0x5   : > { %p201_p3 = scmp.lt.s32.totalorder (!%p168_p2), %s1619_s16, 1  ;;  %vm627_vm0 = vcmask (!%p168_p2), 1046528   ;;  %s1789_s21 = smov (!%p168_p2), 12   ;;  %vm402_vm1 = vsmask.f32 (!%p168_p2), 7424  ;;  %vm946_vm2 = vcmask (!%p168_p2), 31744  }
   0x6   : > { %171 = sbr.rel (%p168_p2) target bundleno = 857 (0x359), region = 28  ;;  %s1790_s22 = smov (!%p168_p2), 20   ;;  %vm979_vm3 = vcmask (!%p168_p2), 64512   ;;  %vm1012_vm4 = vcmask (!%p168_p2), 97280   ;;  %vm1045_vm5 = vcmask (!%p168_p2), 130048   ;;  %vm1078_vm6 = vcmask (!%p168_p2), 162816  }
   0x7   : > { %s1791_s23 = smov (!%p168_p2), 8   ;;  %s1792_s24 = smov (!%p168_p2), 4   ;;  %vm1111_vm7 = vcmask (!%p168_p2), 195584   ;;  %vm1144_vm8 = vcmask (!%p168_p2), 228352   ;;  %vm1177_vm9 = vcmask (!%p168_p2), 261120   ;;  %vm1224_vm10 = vcmask (!%p168_p2), 293888  }
   0x8   : > { %s1793_s25 = smov (!%p168_p2), 16   ;;  %s1794_s26 = smov (!%p168_p2), 24  }
   0x9   : > { %s1795_s27 = smov (!%p168_p2), 28   ;;  %s1796_s28 = smov (!%p168_p2), 32  }
   0xd   : > { %s2440_s16 = smov (!%p201_p3, %s1619_s16), 1 }
   0xe   : > { %s1724_s17 = smul.u32 216, %s2440_s16  ;;  %s1675_s7 = sshll.u32 %s2440_s16, 5 }
   0xf   : > { %s210_s10 = scalar_lea.vmem %s2436_s2, %s1675_s7  ;;  %s1627_s11 = sshll.u32 %s2440_s16, 3 }
  0x10   : > { %s1837_s20 = scalar_lea.vmem %s2434_s0, %s1724_s17  ;;  %s214_s14 = scalar_lea.vmem %s2437_s3, %s1627_s11 }
  0x11   : > { %v1840_v0 = vld [vmem:[%s1837_s20 + $0x6c] sm:$0xff]   ;;  %v1744_v2 = vld [vmem:[%s1837_s20 + $0x14] ss:$0 sps:$4 sm:$0x11]   ;;  %v1849_v3 = vld [vmem:[%s1837_s20] sm:$0xff]   ;;  %s218_s19 = scalar_lea.vmem %s2438_s4, %s1627_s11 }
  0x12   : > { %v1843_v1 = vld [vmem:[%s1837_s20 + $0xc] sm:$0xff]   ;;  %729 = vrot.lane.b32.xlu1 %v1840_v0, %s1789_s21  ;;  %v1855_v5 = vld [vmem:[%s1837_s20 + $0x60] sm:$0xff]   ;;  %v632_v6 = vrot.slane %v1744_v2, 1  ;;  %v1746_v7 = vld [vmem:[%s1837_s20 + $0x8] ss:$0 sps:$4 sm:$0x11]  }
  0x13   : > { %713 = vrot.lane.b32.xlu0 %v1843_v1, %s1789_s21  ;;  %v631_v4 = vrot.slane %v1843_v1, 1  ;;  %v628_v8 = vrot.slane %v1849_v3, 1  ;;  %v652_v9 = vrot.slane %v1855_v5, 1  ;;  %v629_v11 = vrot.slane %v1746_v7, 1  ;;  %v1880_v30 = vld [vmem:[%s1837_s20 + $0x78] sm:$0xff]  }
  0x14   : > { %v1748_v12 = vld [vmem:[%s1837_s20 + $0x68] ss:$0 sps:$4 sm:$0x11]   ;;  %v404_v13 = vshrl.u32 %v1849_v3, 16  ;;  %v406_v14 = vshll.u32 %v1849_v3, 16  ;;  %v411_v15 = vshll.u32 %v1746_v7, 16 }
  0x15   : > { %v1861_v10 = vsel %vm627_vm0, %v631_v4, %v632_v6  ;;  %v655_v16 = vrot.slane %v1840_v0, 1  ;;  %v630_v17 = vsel %vm627_vm0, %v628_v8, %v629_v11  ;;  %v653_v18 = vrot.slane %v1748_v12, 1  ;;  %v1749_v19 = vld [vmem:[%s1837_s20 + $0x74] ss:$0 sps:$4 sm:$0x11]   ;;  %v1884_v35 = vld [vmem:[%s1837_s20 + $0x18] sm:$0xff]  }
  0x16   : > { %v500_v20 = vshrl.u32 %v1855_v5, 16  ;;  %v502_v21 = vshll.u32 %v1855_v5, 16  ;;  %676 = vrot.lane.b32.xlu1 %v630_v17, %s1791_s23  ;;  %v408_v22 = vrot.slane %v406_v14, 1  ;;  %v413_v23 = vrot.slane %v411_v15, 1  ;;  %v1939_v14 = vld [vmem:[%s1837_s20 + $0x24] sm:$0xff]  }
  0x17   : > { %795 = vrot.lane.b32.xlu0 %v1861_v10, %s1790_s22  ;;  %v507_v24 = vshll.u32 %v1748_v12, 16  ;;  %v512_v25 = vshrl.u32 %v1840_v0, 16  ;;  %v1876_v26 = vsel %vm627_vm0, %v652_v9, %v653_v18  ;;  %v656_v27 = vrot.slane %v1749_v19, 1  ;;  %v1752_v42 = vld [vmem:[%s1837_s20 + $0x80] ss:$0 sps:$4 sm:$0x11]  }
  0x18   : > { %v504_v28 = vrot.slane %v502_v21, 1  ;;  %v514_v29 = vshll.u32 %v1840_v0, 16  ;;  %v409_v31 = vor.u32 %v408_v22, %v404_v13  ;;  %v519_v33 = vshll.u32 %v1749_v19, 16  ;;  %v1753_v49 = vld [vmem:[%s1837_s20 + $0x20] ss:$0 sps:$4 sm:$0x11]  }
  0x19   : > { %v509_v32 = vrot.slane %v507_v24, 1  ;;  %v416_v34 = vshrl.u32 %v1843_v1, 16  ;;  %v418_v38 = vshll.u32 %v1843_v1, 16  ;;  %v423_v41 = vshll.u32 %v1744_v2, 16  ;;  %v1934_v13 = vld [vmem:[%s1837_s20 + $0x84] sm:$0xff]  }
  0x1a   : > { %v505_v36 = vor.u32 %v504_v28, %v500_v20  ;;  %v516_v37 = vrot.slane %v514_v29, 1  ;;  %692 = vrot.lane.b32.xlu1 %v1876_v26, %s1791_s23  ;;  %v414_v39 = vsel %vm402_vm1, %v409_v31, %v413_v23  ;;  %v521_v40 = vrot.slane %v519_v33, 1  ;;  %v1756_v15 = vld [vmem:[%s1837_s20 + $0x8c] ss:$0 sps:$4 sm:$0x11]  }
  0x1b   : > { %595 = vrot.lane.b32.xlu0 %v414_v39, %s1792_s24  ;;  %v1893_v43 = vsel %vm627_vm0, %v655_v16, %v656_v27  ;;  %v420_v45 = vrot.slane %v418_v38, 1  ;;  %v526_v46 = vshll.u32 %v1880_v30, 16  ;;  %v425_v48 = vrot.slane %v423_v41, 1  ;;  %v1757_v17 = vld [vmem:[%s1837_s20 + $0x2c] ss:$0 sps:$4 sm:$0x11]  }
  0x1c   : > { %v517_v44 = vor.u32 %v516_v37, %v512_v25  ;;  %v1897_v47 = vsel %vm402_vm1, %v505_v36, %v509_v32  ;;  %v430_v51 = vshll.u32 %v1884_v35, 16  ;;  %v524_v52 = vshrl.u32 %v1880_v30, 16  ;;  %v1974_v39 = vld [vmem:[%s1837_s20 + $0x90] sm:$0xff]   ;;  %v1760_v41 = vld [vmem:[%s1837_s20 + $0x98] ss:$0 sps:$4 sm:$0x11]  }
  0x1d   : > { %v421_v50 = vor.u32 %v420_v45, %v416_v34  ;;  %v528_v54 = vrot.slane %v526_v46, 1  ;;  %v531_v55 = vshll.u32 %v1752_v42, 16  ;;  %v428_v57 = vshrl.u32 %v1884_v35, 16 }
  0x1e   : > { %811 = vrot.lane.b32.xlu1 %v1893_v43, %s1790_s22  ;;  %v1907_v53 = vsel %vm402_vm1, %v517_v44, %v521_v40  ;;  %v432_v58 = vrot.slane %v430_v51, 1  ;;  %v435_v59 = vshll.u32 %v1753_v49, 16  ;;  %v658_v4 = vrot.slane %v1880_v30, 1  ;;  %v1977_v40 = vld [vmem:[%s1837_s20 + $0x30] sm:$0xff]  }
  0x1f   : > { %611 = vrot.lane.b32.xlu0 %v1897_v47, %s1792_s24  ;;  %v426_v56 = vsel %vm402_vm1, %v421_v50, %v425_v48  ;;  %v529_v60 = vor.u32 %v528_v54, %v524_v52  ;;  %v533_v61 = vrot.slane %v531_v55, 1  ;;  %v659_v6 = vrot.slane %v1752_v42, 1  ;;  %v1761_v44 = vld [vmem:[%s1837_s20 + $0x38] ss:$0 sps:$4 sm:$0x11]  }
  0x20   : > { %v433_v62 = vor.u32 %v432_v58, %v428_v57  ;;  %v437_v63 = vrot.slane %v435_v59, 1  ;;  %v634_v8 = vrot.slane %v1884_v35, 1  ;;  %v635_v9 = vrot.slane %v1753_v49, 1 }
  0x21   : > { %v534_v2 = vsel %vm402_vm1, %v529_v60, %v533_v61  ;;  %v660_v11 = vsel %vm627_vm0, %v658_v4, %v659_v6  ;;  %v538_v16 = vshll.u32 %v1934_v13, 16  ;;  %v442_v18 = vshll.u32 %v1939_v14, 16  ;;  %v2015_v6 = vld [vmem:[%s1837_s20 + $0x9c] sm:$0xff]  }
  0x22   : > { %776 = vrot.lane.b32.xlu1 %v1907_v53, %s1793_s25  ;;  %v438_v7 = vsel %vm402_vm1, %v433_v62, %v437_v63  ;;  %v636_v12 = vsel %vm627_vm0, %v634_v8, %v635_v9  ;;  %v543_v20 = vshll.u32 %v1756_v15, 16  ;;  %v440_v21 = vshrl.u32 %v1939_v14, 16  ;;  %v1764_v8 = vld [vmem:[%s1837_s20 + $0xa4] ss:$0 sps:$4 sm:$0x11]  }
  0x23   : > { %760 = vrot.lane.b32.xlu0 %v426_v56, %s1793_s25  ;;  %v540_v19 = vrot.slane %v538_v16, 1  ;;  %v444_v22 = vrot.slane %v442_v18, 1  ;;  %v447_v23 = vshll.u32 %v1757_v17, 16  ;;  %v661_v31 = vrot.slane %v1934_v13, 1 }
  0x24   : > { %v545_v25 = vrot.slane %v543_v20, 1  ;;  %v662_v32 = vrot.slane %v1756_v15, 1  ;;  %v637_v34 = vrot.slane %v1939_v14, 1  ;;  %v638_v36 = vrot.slane %v1757_v17, 1 }
  0x25   : > { %v445_v27 = vor.u32 %v444_v22, %v440_v21  ;;  %v449_v28 = vrot.slane %v447_v23, 1  ;;  %v550_v42 = vshll.u32 %v1974_v39, 16  ;;  %v454_v45 = vshll.u32 %v1977_v40, 16 }
  0x26   : > { %848 = vrot.lane.b32.xlu1 %v1880_v30, %s1794_s26  ;;  %v663_v37 = vsel %vm627_vm0, %v661_v31, %v662_v32  ;;  %v639_v38 = vsel %vm627_vm0, %v637_v34, %v638_v36  ;;  %v548_v46 = vshrl.u32 %v1974_v39, 16  ;;  %v555_v49 = vshll.u32 %v1760_v41, 16 }
  0x27   : > { %832 = vrot.lane.b32.xlu0 %v1884_v35, %s1794_s26  ;;  %v450_v33 = vsel %vm402_vm1, %v445_v27, %v449_v28  ;;  %v552_v48 = vrot.slane %v550_v42, 1  ;;  %v452_v50 = vshrl.u32 %v1977_v40, 16  ;;  %v456_v51 = vrot.slane %v454_v45, 1 }
  0x28   : > { %v459_v52 = vshll.u32 %v1761_v44, 16  ;;  %v557_v55 = vrot.slane %v555_v49, 1  ;;  %v664_v59 = vrot.slane %v1974_v39, 1  ;;  %v665_v60 = vrot.slane %v1760_v41, 1 }
  0x29   : > { %v553_v54 = vor.u32 %v552_v48, %v548_v46  ;;  %v640_v62 = vrot.slane %v1977_v40, 1  ;;  %v641_v63 = vrot.slane %v1761_v44, 1  ;;  %v562_v9 = vshll.u32 %v2015_v6, 16 }
  0x2a   : > { %895 = vrot.lane.b32.xlu1 %v534_v2, %s1795_s27  ;;  %v461_v57 = vrot.slane %v459_v52, 1  ;;  %v560_v15 = vshrl.u32 %v2015_v6, 16  ;;  %v567_v17 = vshll.u32 %v1764_v8, 16  ;;  %v668_v31 = vrot.slane %v1764_v8, 1  ;;  %v2072_v52 = vld [vmem:[%s1837_s20 + $0xa8] sm:$0xff]  }
  0x2b   : > { %879 = vrot.lane.b32.xlu0 %v438_v7, %s1795_s27  ;;  %v1998_v58 = vsel %vm402_vm1, %v553_v54, %v557_v55  ;;  %v642_v4 = vsel %vm627_vm0, %v640_v62, %v641_v63  ;;  %v564_v16 = vrot.slane %v562_v9, 1 }
  0x2c   : > { %v569_v23 = vrot.slane %v567_v17, 1 }
  0x2d   : > { %v565_v22 = vor.u32 %v564_v16, %v560_v15 }
  0x2e   : > { %930 = vrot.lane.b32.xlu1 %v660_v11, %s1796_s28 }
  0x2f   : > { %914 = vrot.lane.b32.xlu0 %v636_v12, %s1796_s28  ;;  %v2040_v28 = vsel %vm402_vm1, %v565_v22, %v569_v23 }
  0x32   : > { %613 = vrot.lane.b32.xlu1 %v1907_v53, %s1792_s24 }
  0x33   : > { %597 = vrot.lane.b32.xlu0 %v426_v56, %s1792_s24  ;;  %v457_v56 = vor.u32 %v456_v51, %v452_v50 }
  0x35   : > { %v462_v61 = vsel %vm402_vm1, %v457_v56, %v461_v57  ;;  %v2077_v57 = vld [vmem:[%s1837_s20 + $0x48] sm:$0xff]  }
  0x36   : > { %694 = vrot.lane.b32.xlu1 %v1893_v43, %s1791_s23 }
  0x37   : > { %678 = vrot.lane.b32.xlu0 %v1861_v10, %s1791_s23  ;;  %v536_v10 = vshrl.u32 %v1934_v13, 16 }
  0x39   : > { %v541_v24 = vor.u32 %v540_v19, %v536_v10 }
  0x3a   : > { %731 = vrot.lane.b32.xlu1 %v1880_v30, %s1789_s21 }
  0x3b   : > { %715 = vrot.lane.b32.xlu0 %v1884_v35, %s1789_s21  ;;  %v546_v29 = vsel %vm402_vm1, %v541_v24, %v545_v25 }
  0x3e   : > { %778 = vrot.lane.b32.xlu1 %v534_v2, %s1793_s25 }
  0x3f   : > { %762 = vrot.lane.b32.xlu0 %v438_v7, %s1793_s25 }
  0x42   : > { %813 = vrot.lane.b32.xlu1 %v660_v11, %s1790_s22 }
  0x43   : > { %797 = vrot.lane.b32.xlu0 %v636_v12, %s1790_s22 }
  0x46   : > { %850 = vrot.lane.b32.xlu1 %v1934_v13, %s1794_s26 }
  0x47   : > { %834 = vrot.lane.b32.xlu0 %v1939_v14, %s1794_s26 }
  0x4a   : > { %897 = vrot.lane.b32.xlu1 %v546_v29, %s1795_s27 }
  0x4b   : > { %881 = vrot.lane.b32.xlu0 %v450_v33, %s1795_s27 }
  0x4e   : > { %932 = vrot.lane.b32.xlu1 %v663_v37, %s1796_s28 }
  0x4f   : > { %916 = vrot.lane.b32.xlu0 %v639_v38, %s1796_s28 }
  0x52   : > { %615 = vrot.lane.b32.xlu1 %v534_v2, %s1792_s24  ;;  %v666_v2 = vsel %vm627_vm0, %v664_v59, %v665_v60 }
  0x53   : > { %599 = vrot.lane.b32.xlu0 %v438_v7, %s1792_s24  ;;  %v2018_v7 = vld [vmem:[%s1837_s20 + $0x3c] sm:$0xff]  }
  0x54   : > { %v464_v18 = vshrl.u32 %v2018_v7, 16  ;;  %v643_v34 = vrot.slane %v2018_v7, 1 }
  0x56   : > { %696 = vrot.lane.b32.xlu1 %v660_v11, %s1791_s23  ;;  %v1765_v11 = vld [vmem:[%s1837_s20 + $0x44] ss:$0 sps:$4 sm:$0x11]  }
  0x57   : > { %680 = vrot.lane.b32.xlu0 %v636_v12, %s1791_s23  ;;  %v466_v12 = vshll.u32 %v2018_v7, 16  ;;  %v471_v19 = vshll.u32 %v1765_v11, 16  ;;  %v644_v36 = vrot.slane %v1765_v11, 1  ;;  %v572_v11 = vshrl.u32 %v2072_v52, 16 }
  0x59   : > { %v468_v10 = vrot.slane %v466_v12, 1  ;;  %v473_v25 = vrot.slane %v471_v19, 1  ;;  %v2055_v41 = vsel %vm627_vm0, %v643_v34, %v644_v36 }
  0x5a   : > { %733 = vrot.lane.b32.xlu1 %v1934_v13, %s1789_s21 }
  0x5b   : > { %717 = vrot.lane.b32.xlu0 %v1939_v14, %s1789_s21  ;;  %v469_v24 = vor.u32 %v468_v10, %v464_v18  ;;  %v476_v18 = vshrl.u32 %v2077_v57, 16 }
  0x5e   : > { %780 = vrot.lane.b32.xlu1 %v546_v29, %s1793_s25 }
  0x5f   : > { %764 = vrot.lane.b32.xlu0 %v450_v33, %s1793_s25 }
  0x62   : > { %815 = vrot.lane.b32.xlu1 %v663_v37, %s1790_s22 }
  0x63   : > { %799 = vrot.lane.b32.xlu0 %v639_v38, %s1790_s22 }
  0x66   : > { %852 = vrot.lane.b32.xlu1 %v1974_v39, %s1794_s26 }
  0x67   : > { %836 = vrot.lane.b32.xlu0 %v1977_v40, %s1794_s26 }
  0x6a   : > { %899 = vrot.lane.b32.xlu1 %v1998_v58, %s1795_s27 }
  0x6b   : > { %883 = vrot.lane.b32.xlu0 %v462_v61, %s1795_s27 }
  0x6e   : > { %934 = vrot.lane.b32.xlu1 %v666_v2, %s1796_s28 }
  0x6f   : > { %918 = vrot.lane.b32.xlu0 %v642_v4, %s1796_s28 }
  0x72   : > { %617 = vrot.lane.b32.xlu1 %v546_v29, %s1792_s24  ;;  %v667_v29 = vrot.slane %v2015_v6, 1 }
  0x73   : > { %601 = vrot.lane.b32.xlu0 %v450_v33, %s1792_s24  ;;  %v2044_v33 = vsel %vm402_vm1, %v469_v24, %v473_v25 }
  0x76   : > { %698 = vrot.lane.b32.xlu1 %v663_v37, %s1791_s23  ;;  %v2052_v37 = vsel %vm627_vm0, %v667_v29, %v668_v31 }
  0x77   : > { %682 = vrot.lane.b32.xlu0 %v639_v38, %s1791_s23 }
  0x7a   : > { %735 = vrot.lane.b32.xlu1 %v1974_v39, %s1789_s21 }
  0x7b   : > { %719 = vrot.lane.b32.xlu0 %v1977_v40, %s1789_s21 }
  0x7e   : > { %782 = vrot.lane.b32.xlu1 %v1998_v58, %s1793_s25 }
  0x7f   : > { %766 = vrot.lane.b32.xlu0 %v462_v61, %s1793_s25 }
  0x82   : > { %817 = vrot.lane.b32.xlu1 %v666_v2, %s1790_s22 }
  0x83   : > { %801 = vrot.lane.b32.xlu0 %v642_v4, %s1790_s22 }
  0x84   : > { %v730_v20 = vpop.permute.xlu1 %729 }
  0x85   : > { %v714_v21 = vpop.permute.xlu0 %713 }
  0x86   : > { %854 = vrot.lane.b32.xlu1 %v2015_v6, %s1794_s26 }
  0x87   : > { %838 = vrot.lane.b32.xlu0 %v2018_v7, %s1794_s26 }
  0x88   : > { %v677_v32 = vpop.permute.xlu1 %676 }
  0x89   : > { %v796_v27 = vpop.permute.xlu0 %795 }
  0x8a   : > { %901 = vrot.lane.b32.xlu1 %v2040_v28, %s1795_s27 }
  0x8b   : > { %885 = vrot.lane.b32.xlu0 %v2044_v33, %s1795_s27 }
  0x8c   : > { %v693_v38 = vpop.permute.xlu1 %692 }
  0x8d   : > { %v596_v42 = vpop.permute.xlu0 %595 }
  0x8e   : > { %936 = vrot.lane.b32.xlu1 %v2052_v37, %s1796_s28  ;;  %v948_v49 = vsel %vm946_vm2, %v1849_v3, %v596_v42 }
  0x8f   : > { %920 = vrot.lane.b32.xlu0 %v2055_v41, %s1796_s28  ;;  %v981_v54 = vsel %vm979_vm3, %v948_v49, %v677_v32 }
  0x90   : > { %v812_v44 = vpop.permute.xlu1 %811  ;;  %v1014_v60 = vsel %vm1012_vm4, %v981_v54, %v714_v21 }
  0x91   : > { %v612_v45 = vpop.permute.xlu0 %611 }
  0x92   : > { %v964_v46 = vsel %vm946_vm2, %v1855_v5, %v612_v45  ;;  %619 = vrot.lane.b32.xlu1 %v1998_v58, %s1792_s24  ;;  %v1768_v58 = vld [vmem:[%s1837_s20 + $0xb0] ss:$0 sps:$4 sm:$0x11]   ;;  %v670_v45 = vrot.slane %v2072_v52, 1 }
  0x93   : > { %603 = vrot.lane.b32.xlu0 %v462_v61, %s1792_s24  ;;  %v997_v50 = vsel %vm979_vm3, %v964_v46, %v693_v38  ;;  %v574_v61 = vshll.u32 %v2072_v52, 16  ;;  %v579_v12 = vshll.u32 %v1768_v58, 16  ;;  %v671_v46 = vrot.slane %v1768_v58, 1 }
  0x94   : > { %v777_v48 = vpop.permute.xlu1 %776  ;;  %v1030_v55 = vsel %vm1012_vm4, %v997_v50, %v730_v20  ;;  %v646_v50 = vrot.slane %v2077_v57, 1 }
  0x95   : > { %v761_v51 = vpop.permute.xlu0 %760  ;;  %v1063_v59 = vsel %vm1045_vm5, %v1030_v55, %v777_v48  ;;  %v576_v17 = vrot.slane %v574_v61, 1  ;;  %v581_v32 = vrot.slane %v579_v12, 1  ;;  %v2127_v55 = vsel %vm627_vm0, %v670_v45, %v671_v46 }
  0x96   : > { %700 = vrot.lane.b32.xlu1 %v666_v2, %s1791_s23  ;;  %v1047_v62 = vsel %vm1045_vm5, %v1014_v60, %v761_v51  ;;  %v1769_v2 = vld [vmem:[%s1837_s20 + $0x50] ss:$0 sps:$4 sm:$0x11]   ;;  %v1096_v9 = vsel %vm1078_vm6, %v1063_v59, %v812_v44 }
  0x97   : > { %684 = vrot.lane.b32.xlu0 %v642_v4, %s1791_s23  ;;  %v478_v4 = vshll.u32 %v2077_v57, 16  ;;  %v1080_v16 = vsel %vm1078_vm6, %v1047_v62, %v796_v27  ;;  %v483_v22 = vshll.u32 %v1769_v2, 16  ;;  %v577_v31 = vor.u32 %v576_v17, %v572_v11 }
  0x98   : > { %v849_v56 = vpop.permute.xlu1 %848  ;;  %v647_v51 = vrot.slane %v1769_v2, 1 }
  0x99   : > { %v833_v3 = vpop.permute.xlu0 %832  ;;  %v1129_v15 = vsel %vm1111_vm7, %v1096_v9, %v849_v56  ;;  %v480_v21 = vrot.slane %v478_v4, 1  ;;  %v485_v38 = vrot.slane %v483_v22, 1  ;;  %v2115_v44 = vsel %vm402_vm1, %v577_v31, %v581_v32  ;;  %v2148_v4 = vld [vmem:[%s1837_s20 + $0x54] sm:$0xff]  }
  0x9a   : > { %737 = vrot.lane.b32.xlu1 %v2015_v6, %s1789_s21  ;;  %v1113_v10 = vsel %vm1111_vm7, %v1080_v16, %v833_v3  ;;  %v2130_v3 = vsel %vm627_vm0, %v646_v50, %v647_v51  ;;  %v490_v16 = vshll.u32 %v2148_v4, 16 }
  0x9b   : > { %721 = vrot.lane.b32.xlu0 %v2018_v7, %s1789_s21  ;;  %v481_v36 = vor.u32 %v480_v21, %v476_v18 }
  0x9c   : > { %v896_v63 = vpop.permute.xlu1 %895  ;;  %v492_v32 = vrot.slane %v490_v16, 1 }
  0x9d   : > { %v880_v8 = vpop.permute.xlu0 %879  ;;  %v1162_v19 = vsel %vm1144_vm8, %v1129_v15, %v896_v63  ;;  %v2119_v49 = vsel %vm402_vm1, %v481_v36, %v485_v38  ;;  %v2143_v63 = vld [vmem:[%s1837_s20 + $0xb4] sm:$0xff]  }
  0x9e   : > { %784 = vrot.lane.b32.xlu1 %v2040_v28, %s1793_s25  ;;  %v1146_v23 = vsel %vm1144_vm8, %v1113_v10, %v880_v8 }
  0x9f   : > { %768 = vrot.lane.b32.xlu0 %v2044_v33, %s1793_s25 }
  0xa0   : > { %v931_v20 = vpop.permute.xlu1 %930 }
  0xa1   : > { %v915_v24 = vpop.permute.xlu0 %914  ;;  %v1195_v25 = vsel %vm1177_vm9, %v1162_v19, %v931_v20  ;;  %v584_v20 = vshrl.u32 %v2143_v63, 16 }
  0xa2   : > { %819 = vrot.lane.b32.xlu1 %v2052_v37, %s1790_s22  ;;  %1716 = vmatprep.subr.msk.bf16.mxu0 %vm1224_vm10, %v1195_v25  ;;  %v1179_v27 = vsel %vm1177_vm9, %v1146_v23, %v915_v24  ;;  %v488_v25 = vshrl.u32 %v2148_v4, 16 }
  0xa3   : > { %803 = vrot.lane.b32.xlu0 %v2055_v41, %s1790_s22  ;;  %v1231_v29 = vsel %vm1224_vm10, %v1179_v27, 0 }
  0xa4   : > { %1681 = vmatpush3.bf16.xpose.msra.mxu0 %v1231_v29  ;;  %v614_v34 = vpop.permute.xlu1 %613 }
  0xa5   : > { %v598_v42 = vpop.permute.xlu0 %597 }
  0xa6   : > { %856 = vrot.lane.b32.xlu1 %v2072_v52, %s1794_s26 }
  0xa7   : > { %840 = vrot.lane.b32.xlu0 %v2077_v57, %s1794_s26 }
  0xa8   : > { %v695_v48 = vpop.permute.xlu1 %694 }
  0xa9   : > { %v679_v54 = vpop.permute.xlu0 %678 }
  0xaa   : > { %903 = vrot.lane.b32.xlu1 %v2115_v44, %s1795_s27 }
  0xab   : > { %887 = vrot.lane.b32.xlu0 %v2119_v49, %s1795_s27 }
  0xac   : > { %v732_v56 = vpop.permute.xlu1 %731 }
  0xad   : > { %v716_v58 = vpop.permute.xlu0 %715 }
  0xae   : > { %938 = vrot.lane.b32.xlu1 %v2127_v55, %s1796_s28 }
  0xaf   : > { %922 = vrot.lane.b32.xlu0 %v2130_v3, %s1796_s28 }
  0xb0   : > { %v779_v59 = vpop.permute.xlu1 %778 }
  0xb1   : > { %v763_v60 = vpop.permute.xlu0 %762 }
  0xb2   : > { %621 = vrot.lane.b32.xlu1 %v2040_v28, %s1792_s24  ;;  %v966_v28 = vsel %vm946_vm2, %v1840_v0, %v614_v34  ;;  %v1773_v0 = vld [vmem:[%s1837_s20 + $0x5c] ss:$0 sps:$4 sm:$0x11]  }
  0xb3   : > { %605 = vrot.lane.b32.xlu0 %v2044_v33, %s1792_s24  ;;  %v586_v33 = vshll.u32 %v2143_v63, 16  ;;  %v999_v9 = vsel %vm979_vm3, %v966_v28, %v695_v48  ;;  %v495_v34 = vshll.u32 %v1773_v0, 16  ;;  %v650_v28 = vrot.slane %v1773_v0, 1 }
  0xb4   : > { %v814_v61 = vpop.permute.xlu1 %813  ;;  %v1032_v12 = vsel %vm1012_vm4, %v999_v9, %v732_v56 }
  0xb5   : > { %v798_v62 = vpop.permute.xlu0 %797  ;;  %v1065_v18 = vsel %vm1045_vm5, %v1032_v12, %v779_v59  ;;  %v588_v21 = vrot.slane %v586_v33, 1  ;;  %v497_v56 = vrot.slane %v495_v34, 1 }
  0xb6   : > { %702 = vrot.lane.b32.xlu1 %v2052_v37, %s1791_s23  ;;  %v950_v37 = vsel %vm946_vm2, %v1843_v1, %v598_v42  ;;  %v1098_v19 = vsel %vm1078_vm6, %v1065_v18, %v814_v61 }
  0xb7   : > { %686 = vrot.lane.b32.xlu0 %v2055_v41, %s1791_s23  ;;  %v1772_v41 = vld [vmem:[%s1837_s20 + $0xbc] ss:$0 sps:$4 sm:$0x11]   ;;  %v983_v11 = vsel %vm979_vm3, %v950_v37, %v679_v54  ;;  %v589_v48 = vor.u32 %v588_v21, %v584_v20  ;;  %v493_v54 = vor.u32 %v492_v32, %v488_v25 }
  0xb8   : > { %v851_v2 = vpop.permute.xlu1 %850  ;;  %v1016_v17 = vsel %vm1012_vm4, %v983_v11, %v716_v58  ;;  %v591_v24 = vshll.u32 %v1772_v41, 16  ;;  %v674_v61 = vrot.slane %v1772_v41, 1 }
  0xb9   : > { %v835_v8 = vpop.permute.xlu0 %834  ;;  %v1049_v1 = vsel %vm1045_vm5, %v1016_v17, %v763_v60  ;;  %v1131_v23 = vsel %vm1111_vm7, %v1098_v19, %v851_v2  ;;  %v673_v60 = vrot.slane %v2143_v63, 1  ;;  %v2197_v2 = vsel %vm402_vm1, %v493_v54, %v497_v56  ;;  %v2223_v17 = vld [vmem:[%s1837_s20 + $0xc0] sm:$0xff]  }
  0xba   : > { %739 = vrot.lane.b32.xlu1 %v2072_v52, %s1789_s21  ;;  %v1082_v22 = vsel %vm1078_vm6, %v1049_v1, %v798_v62  ;;  %v593_v50 = vrot.slane %v591_v24, 1  ;;  %v749_v25 = vshrl.u32 %v2223_v17, 16 }
  0xbb   : > { %723 = vrot.lane.b32.xlu0 %v2077_v57, %s1789_s21  ;;  %v1115_v27 = vsel %vm1111_vm7, %v1082_v22, %v835_v8  ;;  %v649_v8 = vrot.slane %v2148_v4, 1  ;;  %v2205_v37 = vsel %vm627_vm0, %v673_v60, %v674_v61  ;;  %v792_v61 = vrot.slane %v2223_v17, 1 }
  0xbc   : > { %v898_v15 = vpop.permute.xlu1 %897  ;;  %v2193_v59 = vsel %vm402_vm1, %v589_v48, %v593_v50 }
  0xbd   : > { %v882_v10 = vpop.permute.xlu0 %881  ;;  %v1164_v29 = vsel %vm1144_vm8, %v1131_v23, %v898_v15  ;;  %v2208_v41 = vsel %vm627_vm0, %v649_v8, %v650_v28 }
  0xbe   : > { %786 = vrot.lane.b32.xlu1 %v2115_v44, %s1793_s25  ;;  %v1148_v36 = vsel %vm1144_vm8, %v1115_v27, %v882_v10 }
  0xbf   : > { %770 = vrot.lane.b32.xlu0 %v2119_v49, %s1793_s25 }
  0xc0   : > { %v933_v31 = vpop.permute.xlu1 %932 }
  0xc1   : > { %v1197_v38 = vsel %vm1177_vm9, %v1164_v29, %v933_v31  ;;  %v917_v42 = vpop.permute.xlu0 %916 }
  0xc2   : > { %v1181_v45 = vsel %vm1177_vm9, %v1148_v36, %v917_v42  ;;  %821 = vrot.lane.b32.xlu1 %v2127_v55, %s1790_s22  ;;  %1717 = vmatprep.subr.msk.bf16.mxu0 %vm1224_vm10, %v1197_v38 }
  0xc3   : > { %805 = vrot.lane.b32.xlu0 %v2130_v3, %s1790_s22  ;;  %v1233_v46 = vsel %vm1224_vm10, %v1181_v45, 0 }
  0xc4   : > { %1683 = vmatpush3.bf16.xpose.msra.mxu0 %v1233_v46  ;;  %v616_v51 = vpop.permute.xlu1 %615 }
  0xc5   : > { %v600_v58 = vpop.permute.xlu0 %599  ;;  %v968_v1 = vsel %vm946_vm2, %v1880_v30, %v616_v51 }
  0xc6   : > { %858 = vrot.lane.b32.xlu1 %v2143_v63, %s1794_s26 }
  0xc7   : > { %842 = vrot.lane.b32.xlu0 %v2148_v4, %s1794_s26 }
  0xc8   : > { %v697_v62 = vpop.permute.xlu1 %696 }
  0xc9   : > { %v681_v33 = vpop.permute.xlu0 %680 }
  0xca   : > { %905 = vrot.lane.b32.xlu1 %v2193_v59, %s1795_s27 }
  0xcb   : > { %889 = vrot.lane.b32.xlu0 %v2197_v2, %s1795_s27 }
  0xcc   : > { %v734_v9 = vpop.permute.xlu1 %733 }
  0xcd   : > { %v718_v11 = vpop.permute.xlu0 %717 }
  0xce   : > { %940 = vrot.lane.b32.xlu1 %v2205_v37, %s1796_s28 }
  0xcf   : > { %924 = vrot.lane.b32.xlu0 %v2208_v41, %s1796_s28 }
  0xd0   : > { %v781_v12 = vpop.permute.xlu1 %780 }
  0xd1   : > { %v765_v15 = vpop.permute.xlu0 %764 }
  0xd2   : > { %623 = vrot.lane.b32.xlu1 %v2115_v44, %s1792_s24  ;;  %v952_v44 = vsel %vm946_vm2, %v1884_v35, %v600_v58 }
  0xd3   : > { %607 = vrot.lane.b32.xlu0 %v2119_v49, %s1792_s24  ;;  %v1001_v49 = vsel %vm979_vm3, %v968_v1, %v697_v62  ;;  %v985_v19 = vsel %vm979_vm3, %v952_v44, %v681_v33 }
  0xd4   : > { %v816_v0 = vpop.permute.xlu1 %815  ;;  %v1034_v20 = vsel %vm1012_vm4, %v1001_v49, %v734_v9  ;;  %v1018_v30 = vsel %vm1012_vm4, %v985_v19, %v718_v11 }
  0xd5   : > { %v800_v16 = vpop.permute.xlu0 %799  ;;  %v1067_v22 = vsel %vm1045_vm5, %v1034_v20, %v781_v12  ;;  %v1051_v35 = vsel %vm1045_vm5, %v1018_v30, %v765_v15 }
  0xd6   : > { %704 = vrot.lane.b32.xlu1 %v2127_v55, %s1791_s23  ;;  %v1775_v55 = vld [vmem:[%s1837_s20 + $0xc8] ss:$0 sps:$4 sm:$0x11]   ;;  %v1100_v24 = vsel %vm1078_vm6, %v1067_v22, %v816_v0  ;;  %v1084_v27 = vsel %vm1078_vm6, %v1051_v35, %v800_v16 }
  0xd7   : > { %688 = vrot.lane.b32.xlu0 %v2130_v3, %s1791_s23  ;;  %v751_v3 = vshll.u32 %v2223_v17, 16  ;;  %v756_v32 = vshll.u32 %v1775_v55, 16  ;;  %v793_v62 = vrot.slane %v1775_v55, 1 }
  0xd8   : > { %v853_v18 = vpop.permute.xlu1 %852 }
  0xd9   : > { %v837_v10 = vpop.permute.xlu0 %836  ;;  %v1133_v29 = vsel %vm1111_vm7, %v1100_v24, %v853_v18  ;;  %v753_v31 = vrot.slane %v751_v3, 1  ;;  %v758_v54 = vrot.slane %v756_v32, 1  ;;  %v794_v33 = vsel %vm627_vm0, %v792_v61, %v793_v62  ;;  %v1776_v18 = vld [vmem:[%s1837_s20 + $0xcc] sm:$0xff]  }
  0xda   : > { %741 = vrot.lane.b32.xlu1 %v2143_v63, %s1789_s21  ;;  %v1117_v34 = vsel %vm1111_vm7, %v1084_v27, %v837_v10  ;;  %v870_v49 = vshll.u32 %v1776_v18, 16 }
  0xdb   : > { %725 = vrot.lane.b32.xlu0 %v2148_v4, %s1789_s21  ;;  %v754_v51 = vor.u32 %v753_v31, %v749_v25 }
  0xdc   : > { %v900_v21 = vpop.permute.xlu1 %899  ;;  %v872_v22 = vrot.slane %v870_v49, 1 }
  0xdd   : > { %v884_v23 = vpop.permute.xlu0 %883  ;;  %v1166_v36 = vsel %vm1144_vm8, %v1133_v29, %v900_v21  ;;  %v759_v60 = vsel %vm402_vm1, %v754_v51, %v758_v54  ;;  %v868_v21 = vshrl.u32 %v1776_v18, 16 }
  0xde   : > { %788 = vrot.lane.b32.xlu1 %v2193_v59, %s1793_s25  ;;  %v1150_v42 = vsel %vm1144_vm8, %v1117_v34, %v884_v23 }
  0xdf   : > { %772 = vrot.lane.b32.xlu0 %v2197_v2, %s1793_s25  ;;  %v873_v34 = vor.u32 %v872_v22, %v868_v21 }
  0xe0   : > { %v935_v38 = vpop.permute.xlu1 %934 }
  0xe1   : > { %v1199_v45 = vsel %vm1177_vm9, %v1166_v36, %v935_v38  ;;  %v919_v46 = vpop.permute.xlu0 %918 }
  0xe2   : > { %v1183_v48 = vsel %vm1177_vm9, %v1150_v42, %v919_v46  ;;  %823 = vrot.lane.b32.xlu1 %v2205_v37, %s1790_s22  ;;  %1718 = vmatprep.subr.msk.bf16.mxu0 %vm1224_vm10, %v1199_v45  ;;  %v2316_v42 = vld [vmem:[%s2435_s1] sm:$0xff]   ;;  %v1780_v46 = vld [vmem:[%s1837_s20 + $0x6c] sm:$0xff]  }
  0xe3   : > { %807 = vrot.lane.b32.xlu0 %v2208_v41, %s1790_s22  ;;  %v1235_v50 = vsel %vm1224_vm10, %v1183_v48, 0  ;;  %1696 = vmatprep.mubr.msk.bf16.mxu0 %vm1224_vm10, %v2316_v42  ;;  %v911_v48 = vrot.slane %v1776_v18, 1 }
  0xe4   : > { %1685 = vmatpush3.bf16.xpose.msra.mxu0 %v1235_v50  ;;  %v618_v56 = vpop.permute.xlu1 %617 }
  0xe5   : > { %v602_v58 = vpop.permute.xlu0 %601  ;;  %v970_v44 = vsel %vm946_vm2, %v1934_v13, %v618_v56 }
  0xe6   : > { %860 = vrot.lane.b32.xlu1 %v2223_v17, %s1794_s26 }
  0xe7   : > { %844 = vrot.lane.b32.xlu0 %v1855_v5, %s1794_s26 }
  0xe8   : > { %v699_v8 = vpop.permute.xlu1 %698 }
  0xe9   : > { %v683_v28 = vpop.permute.xlu0 %682 }
  0xea   : > { %907 = vrot.lane.b32.xlu1 %v759_v60, %s1795_s27 }
  0xeb   : > { %891 = vrot.lane.b32.xlu0 %v1897_v47, %s1795_s27 }
  0xec   : > { %v736_v9 = vpop.permute.xlu1 %735 }
  0xed   : > { %v720_v11 = vpop.permute.xlu0 %719 }
  0xee   : > { %942 = vrot.lane.b32.xlu1 %v794_v33, %s1796_s28 }
  0xef   : > { %926 = vrot.lane.b32.xlu0 %v1876_v26, %s1796_s28 }
  0xf0   : > { %v783_v12 = vpop.permute.xlu1 %782 }
  0xf1   : > { %v767_v15 = vpop.permute.xlu0 %766 }
  0xf2   : > { %625 = vrot.lane.b32.xlu1 %v2193_v59, %s1792_s24  ;;  %v954_v59 = vsel %vm946_vm2, %v1939_v14, %v602_v58 }
  0xf3   : > { %609 = vrot.lane.b32.xlu0 %v2197_v2, %s1792_s24  ;;  %v1003_v2 = vsel %vm979_vm3, %v970_v44, %v699_v8 }
  0xf4   : > { %v818_v0 = vpop.permute.xlu1 %817  ;;  %v1036_v55 = vsel %vm1012_vm4, %v1003_v2, %v736_v9 }
  0xf5   : > { %v802_v16 = vpop.permute.xlu0 %801  ;;  %v1069_v19 = vsel %vm1045_vm5, %v1036_v55, %v783_v12 }
  0xf6   : > { %706 = vrot.lane.b32.xlu1 %v2205_v37, %s1791_s23  ;;  %v1777_v37 = vld [vmem:[%s1837_s20 + $0xd4] ss:$0 sps:$4 sm:$0x11]   ;;  %v1102_v14 = vsel %vm1078_vm6, %v1069_v19, %v818_v0 }
  0xf7   : > { %690 = vrot.lane.b32.xlu0 %v2208_v41, %s1791_s23  ;;  %v987_v41 = vsel %vm979_vm3, %v954_v59, %v683_v28  ;;  %v875_v23 = vshll.u32 %v1777_v37, 16  ;;  %v912_v50 = vrot.slane %v1777_v37, 1 }
  0xf8   : > { %v855_v10 = vpop.permute.xlu1 %854  ;;  %v1020_v13 = vsel %vm1012_vm4, %v987_v41, %v720_v11 }
  0xf9   : > { %v839_v1 = vpop.permute.xlu0 %838  ;;  %v1053_v20 = vsel %vm1045_vm5, %v1020_v13, %v767_v15  ;;  %v1135_v30 = vsel %vm1111_vm7, %v1102_v14, %v855_v10  ;;  %v877_v36 = vrot.slane %v875_v23, 1  ;;  %v913_v56 = vsel %vm627_vm0, %v911_v48, %v912_v50 }
  0xfa   : > { %743 = vrot.lane.b32.xlu1 %v2223_v17, %s1789_s21 }
  0xfb   : > { %727 = vrot.lane.b32.xlu0 %v1855_v5, %s1789_s21  ;;  %v1086_v5 = vsel %vm1078_vm6, %v1053_v20, %v802_v16 }
  0xfc   : > { %v902_v3 = vpop.permute.xlu1 %901  ;;  %v1119_v35 = vsel %vm1111_vm7, %v1086_v5, %v839_v1 }
  0xfd   : > { %v886_v17 = vpop.permute.xlu0 %885  ;;  %v1168_v24 = vsel %vm1144_vm8, %v1135_v30, %v902_v3 }
  0xfe   : > { %790 = vrot.lane.b32.xlu1 %v759_v60, %s1793_s25  ;;  %v1152_v27 = vsel %vm1144_vm8, %v1119_v35, %v886_v17 }
  0xff   : > { %774 = vrot.lane.b32.xlu0 %v1897_v47, %s1793_s25 }
 0x100   : > { %v937_v25 = vpop.permute.xlu1 %936 }
 0x101   : > { %v1201_v29 = vsel %vm1177_vm9, %v1168_v24, %v937_v25  ;;  %v921_v31 = vpop.permute.xlu0 %920 }
 0x102   : > { %v1185_v32 = vsel %vm1177_vm9, %v1152_v27, %v921_v31  ;;  %825 = vrot.lane.b32.xlu1 %v794_v33, %s1790_s22  ;;  %1719 = vmatprep.subr.msk.bf16.mxu0 %vm1224_vm10, %v1201_v29 }
 0x103   : > { %809 = vrot.lane.b32.xlu0 %v1876_v26, %s1790_s22  ;;  %v1237_v47 = vsel %vm1224_vm10, %v1185_v32, 0  ;;  %v878_v26 = vsel %vm402_vm1, %v873_v34, %v877_v36 }
 0x104   : > { %1687 = vmatpush3.bf16.xpose.msra.mxu0 %v1237_v47  ;;  %v620_v38 = vpop.permute.xlu1 %619 }
 0x105   : > { %v604_v45 = vpop.permute.xlu0 %603  ;;  %v972_v11 = vsel %vm946_vm2, %v1974_v39, %v620_v38 }
 0x106   : > { %862 = vrot.lane.b32.xlu1 %v1776_v18, %s1794_s26 }
 0x107   : > { %846 = vrot.lane.b32.xlu0 %v1780_v46, %s1794_s26 }
 0x108   : > { %v701_v51 = vpop.permute.xlu1 %700 }
 0x109   : > { %v685_v54 = vpop.permute.xlu0 %684  ;;  %v1005_v12 = vsel %vm979_vm3, %v972_v11, %v701_v51 }
 0x10a   : > { %909 = vrot.lane.b32.xlu1 %v878_v26, %s1795_s27 }
 0x10b   : > { %893 = vrot.lane.b32.xlu0 %v1907_v53, %s1795_s27  ;;  %v956_v53 = vsel %vm946_vm2, %v1977_v40, %v604_v45 }
 0x10c   : > { %v738_v58 = vpop.permute.xlu1 %737  ;;  %v989_v15 = vsel %vm979_vm3, %v956_v53, %v685_v54 }
 0x10d   : > { %v722_v60 = vpop.permute.xlu0 %721  ;;  %v1038_v0 = vsel %vm1012_vm4, %v1005_v12, %v738_v58 }
 0x10e   : > { %944 = vrot.lane.b32.xlu1 %v913_v56, %s1796_s28 }
 0x10f   : > { %928 = vrot.lane.b32.xlu0 %v1893_v43, %s1796_s28  ;;  %v1022_v43 = vsel %vm1012_vm4, %v989_v15, %v722_v60 }
 0x110   : > { %v785_v61 = vpop.permute.xlu1 %784 }
 0x111   : > { %v769_v62 = vpop.permute.xlu0 %768  ;;  %v1071_v18 = vsel %vm1045_vm5, %v1038_v0, %v785_v61 }
 0x112   : > { %v1055_v1 = vsel %vm1045_vm5, %v1022_v43, %v769_v62 }
 0x114   : > { %v820_v8 = vpop.permute.xlu1 %819 }
 0x115   : > { %v804_v28 = vpop.permute.xlu0 %803  ;;  %v1104_v44 = vsel %vm1078_vm6, %v1071_v18, %v820_v8 }
 0x116   : > { %v1088_v39 = vsel %vm1078_vm6, %v1055_v1, %v804_v28 }
 0x118   : > { %v857_v33 = vpop.permute.xlu1 %856 }
 0x119   : > { %v841_v9 = vpop.permute.xlu0 %840  ;;  %v1137_v40 = vsel %vm1111_vm7, %v1104_v44, %v857_v33 }
 0x11a   : > { %v1121_v59 = vsel %vm1111_vm7, %v1088_v39, %v841_v9 }
 0x11c   : > { %v904_v16 = vpop.permute.xlu1 %903 }
 0x11d   : > { %v888_v10 = vpop.permute.xlu0 %887  ;;  %v1170_v2 = vsel %vm1144_vm8, %v1137_v40, %v904_v16 }
 0x11e   : > { %v1154_v49 = vsel %vm1144_vm8, %v1121_v59, %v888_v10 }
 0x120   : > { %v939_v37 = vpop.permute.xlu1 %938 }
 0x121   : > { %v1203_v41 = vsel %vm1177_vm9, %v1170_v2, %v939_v37  ;;  %v923_v55 = vpop.permute.xlu0 %922 }
 0x122   : > { %v1187_v3 = vsel %vm1177_vm9, %v1154_v49, %v923_v55  ;;  %1720 = vmatprep.subr.msk.bf16.mxu0 %vm1224_vm10, %v1203_v41 }
 0x123   : > { %v1239_v13 = vsel %vm1224_vm10, %v1187_v3, 0 }
 0x124   : > { %1689 = vmatpush3.bf16.xpose.msra.mxu0 %v1239_v13  ;;  %v622_v19 = vpop.permute.xlu1 %621 }
 0x125   : > { %v606_v17 = vpop.permute.xlu0 %605  ;;  %v974_v27 = vsel %vm946_vm2, %v2015_v6, %v622_v19 }
 0x126   : > { %v958_v29 = vsel %vm946_vm2, %v2018_v7, %v606_v17 }
 0x128   : > { %v703_v20 = vpop.permute.xlu1 %702 }
 0x129   : > { %v687_v14 = vpop.permute.xlu0 %686  ;;  %v1007_v31 = vsel %vm979_vm3, %v974_v27, %v703_v20 }
 0x12a   : > { %v991_v32 = vsel %vm979_vm3, %v958_v29, %v687_v14 }
 0x12c   : > { %v740_v21 = vpop.permute.xlu1 %739 }
 0x12d   : > { %v724_v5 = vpop.permute.xlu0 %723  ;;  %v1040_v47 = vsel %vm1012_vm4, %v1007_v31, %v740_v21 }
 0x12e   : > { %v1024_v36 = vsel %vm1012_vm4, %v991_v32, %v724_v5 }
 0x130   : > { %v787_v30 = vpop.permute.xlu1 %786 }
 0x131   : > { %v771_v22 = vpop.permute.xlu0 %770  ;;  %v1073_v38 = vsel %vm1045_vm5, %v1040_v47, %v787_v30 }
 0x132   : > { %v1057_v46 = vsel %vm1045_vm5, %v1024_v36, %v771_v22 }
 0x134   : > { %v822_v23 = vpop.permute.xlu1 %821 }
 0x135   : > { %v806_v35 = vpop.permute.xlu0 %805  ;;  %v1106_v26 = vsel %vm1078_vm6, %v1073_v38, %v822_v23 }
 0x136   : > { %v1090_v6 = vsel %vm1078_vm6, %v1057_v46, %v806_v35 }
 0x138   : > { %v859_v24 = vpop.permute.xlu1 %858 }
 0x139   : > { %v843_v25 = vpop.permute.xlu0 %842  ;;  %v1139_v7 = vsel %vm1111_vm7, %v1106_v26, %v859_v24 }
 0x13a   : > { %v1123_v48 = vsel %vm1111_vm7, %v1090_v6, %v843_v25 }
 0x13c   : > { %v906_v34 = vpop.permute.xlu1 %905 }
 0x13d   : > { %v890_v45 = vpop.permute.xlu0 %889  ;;  %v1172_v50 = vsel %vm1144_vm8, %v1139_v7, %v906_v34 }
 0x13e   : > { %v1156_v54 = vsel %vm1144_vm8, %v1123_v48, %v890_v45 }
 0x140   : > { %v941_v51 = vpop.permute.xlu1 %940 }
 0x141   : > { %v1205_v56 = vsel %vm1177_vm9, %v1172_v50, %v941_v51  ;;  %v925_v58 = vpop.permute.xlu0 %924 }
 0x142   : > { %v1189_v60 = vsel %vm1177_vm9, %v1156_v54, %v925_v58  ;;  %1721 = vmatprep.subr.msk.bf16.mxu0 %vm1224_vm10, %v1205_v56 }
 0x143   : > { %v1241_v61 = vsel %vm1224_vm10, %v1189_v60, 0 }
 0x144   : > { %1691 = vmatpush3.bf16.xpose.msra.mxu0 %v1241_v61  ;;  %v624_v62 = vpop.permute.xlu1 %623 }
 0x145   : > { %v608_v8 = vpop.permute.xlu0 %607  ;;  %v976_v18 = vsel %vm946_vm2, %v2072_v52, %v624_v62 }
 0x146   : > { %v960_v10 = vsel %vm946_vm2, %v2077_v57, %v608_v8 }
 0x148   : > { %v705_v28 = vpop.permute.xlu1 %704 }
 0x149   : > { %v689_v33 = vpop.permute.xlu0 %688  ;;  %v1009_v1 = vsel %vm979_vm3, %v976_v18, %v705_v28 }
 0x14a   : > { %v993_v44 = vsel %vm979_vm3, %v960_v10, %v689_v33  ;;  %v1779_v33 = vld [vmem:[%s2435_s1 + $0x8] sm:$0xff]  }
 0x14c   : > { %v742_v9 = vpop.permute.xlu1 %741 }
 0x14d   : > { %v726_v11 = vpop.permute.xlu0 %725  ;;  %v1042_v39 = vsel %vm1012_vm4, %v1009_v1, %v742_v9  ;;  %v1797_v9 = vmov 1.0  }
 0x14e   : > { %v1026_v59 = vsel %vm1012_vm4, %v993_v44, %v726_v11  ;;  %1416 = vmatprep.mubr.f32.mxu1 %v1797_v9 }
 0x150   : > { %v789_v53 = vpop.permute.xlu1 %788 }
 0x151   : > { %v773_v12 = vpop.permute.xlu0 %772  ;;  %v1075_v2 = vsel %vm1045_vm5, %v1042_v39, %v789_v53 }
 0x152   : > { %v1059_v49 = vsel %vm1045_vm5, %v1026_v59, %v773_v12 }
 0x154   : > { %v824_v15 = vpop.permute.xlu1 %823 }
 0x155   : > { %v808_v0 = vpop.permute.xlu0 %807  ;;  %v1108_v41 = vsel %vm1078_vm6, %v1075_v2, %v824_v15 }
 0x156   : > { %v1092_v52 = vsel %vm1078_vm6, %v1059_v49, %v808_v0 }
 0x158   : > { %v861_v16 = vpop.permute.xlu1 %860 }
 0x159   : > { %v845_v43 = vpop.permute.xlu0 %844  ;;  %v1141_v57 = vsel %vm1111_vm7, %v1108_v41, %v861_v16 }
 0x15a   : > { %v1125_v55 = vsel %vm1111_vm7, %v1092_v52, %v845_v43 }
 0x15c   : > { %v908_v40 = vpop.permute.xlu1 %907 }
 0x15d   : > { %v892_v37 = vpop.permute.xlu0 %891  ;;  %v1174_v3 = vsel %vm1144_vm8, %v1141_v57, %v908_v40 }
 0x15e   : > { %v1158_v19 = vsel %vm1144_vm8, %v1125_v55, %v892_v37 }
 0x160   : > { %v943_v13 = vpop.permute.xlu1 %942 }
 0x161   : > { %v1207_v17 = vsel %vm1177_vm9, %v1174_v3, %v943_v13  ;;  %v927_v20 = vpop.permute.xlu0 %926 }
 0x162   : > { %v1191_v14 = vsel %vm1177_vm9, %v1158_v19, %v927_v20  ;;  %1722 = vmatprep.subr.msk.bf16.mxu0 %vm1224_vm10, %v1207_v17 }
 0x163   : > { %v1243_v21 = vsel %vm1224_vm10, %v1191_v14, 0 }
 0x164   : > { %1693 = vmatpush3.bf16.xpose.msra.mxu0 %v1243_v21  ;;  %v626_v5 = vpop.permute.xlu1 %625 }
 0x165   : > { %v610_v30 = vpop.permute.xlu0 %609  ;;  %v978_v34 = vsel %vm946_vm2, %v2143_v63, %v626_v5 }
 0x166   : > { %v962_v36 = vsel %vm946_vm2, %v2148_v4, %v610_v30 }
 0x168   : > { %v707_v22 = vpop.permute.xlu1 %706 }
 0x169   : > { %v691_v23 = vpop.permute.xlu0 %690  ;;  %v1011_v38 = vsel %vm979_vm3, %v978_v34, %v707_v22 }
 0x16a   : > { %v995_v45 = vsel %vm979_vm3, %v962_v36, %v691_v23 }
 0x16c   : > { %v744_v35 = vpop.permute.xlu1 %743 }
 0x16d   : > { %v728_v24 = vpop.permute.xlu0 %727  ;;  %v1044_v46 = vsel %vm1012_vm4, %v1011_v38, %v744_v35 }
 0x16e   : > { %v1028_v6 = vsel %vm1012_vm4, %v995_v45, %v728_v24 }
 0x170   : > { %v791_v25 = vpop.permute.xlu1 %790 }
 0x171   : > { %v775_v27 = vpop.permute.xlu0 %774  ;;  %v1077_v7 = vsel %vm1045_vm5, %v1044_v46, %v791_v25 }
 0x172   : > { %v1061_v50 = vsel %vm1045_vm5, %v1028_v6, %v775_v27 }
 0x174   : > { %v826_v29 = vpop.permute.xlu1 %825 }
 0x175   : > { %v810_v31 = vpop.permute.xlu0 %809  ;;  %v1110_v51 = vsel %vm1078_vm6, %v1077_v7, %v826_v29 }
 0x176   : > { %v1094_v63 = vsel %vm1078_vm6, %v1061_v50, %v810_v31 }
 0x178   : > { %v863_v32 = vpop.permute.xlu1 %862 }
 0x179   : > { %v847_v47 = vpop.permute.xlu0 %846  ;;  %v1143_v4 = vsel %vm1111_vm7, %v1110_v51, %v863_v32 }
 0x17a   : > { %v1127_v54 = vsel %vm1111_vm7, %v1094_v63, %v847_v47 }
 0x17c   : > { %v910_v26 = vpop.permute.xlu1 %909 }
 0x17d   : > { %v894_v48 = vpop.permute.xlu0 %893  ;;  %v1176_v56 = vsel %vm1144_vm8, %v1143_v4, %v910_v26 }
 0x17e   : > { %v1160_v60 = vsel %vm1144_vm8, %v1127_v54, %v894_v48 }
 0x180   : > { %v945_v58 = vpop.permute.xlu1 %944 }
 0x181   : > { %v1209_v61 = vsel %vm1177_vm9, %v1176_v56, %v945_v58  ;;  %v929_v62 = vpop.permute.xlu0 %928 }
 0x182   : > { %v1193_v8 = vsel %vm1177_vm9, %v1160_v60, %v929_v62  ;;  %1723 = vmatprep.subr.msk.bf16.mxu0 %vm1224_vm10, %v1209_v61 }
 0x183   : > { %v1245_v28 = vsel %vm1224_vm10, %v1193_v8, 0 }
 0x184   : > { %1695 = vmatpush3.bf16.xpose.msra.mxu0 %v1245_v28 }
 0x18b   : > { %1697 = vmatmul.mubr.msk.bf16.vlgmr.msra.gmra.mrb[0].mxu0 %vm1224_vm10, %v2316_v42 }
 0x18c   : > { %1698 = vmatprep.mubr.msk.bf16.mxu0 %vm1224_vm10, %v1779_v33 }
 0x193   : > { %1699 = vmatmul.mubr.msk.bf16.gmra.mrb[4].mxu0 %vm1224_vm10, %v1779_v33 }
 0x25e   : > { %v1297_v11 = vpop.f32.mrb[0].mxu0 }
 0x25f   : > { %v1299_v53 = vpop.f32.mrb[1].mxu0 }
 0x260   : > { %v1676_v12 = vpack.c.bf16 %v1299_v53, %v1297_v11  ;;  %v1301_v15 = vpop.f32.mrb[2].mxu0 }
 0x261   : > { %v1316_v0 = vpack.c.bf16 %v1301_v15, %v1297_v11  ;;  %v1303_v16 = vpop.f32.mrb[3].mxu0 }
 0x262   : > { %1340 = vst [vmem:[%s210_s10] sm:$0xff] %v1676_v12  ;;  %v1317_v43 = vpack.c.bf16 %v1303_v16, %v1299_v53  ;;  %v1677_v42 = vpack.c.bf16 %v1303_v16, %v1301_v15 }
 0x263   : > { %v1344_v57 = vunpack.c.l.bf16 %v1316_v0  ;;  %v1346_v55 = vunpack.c.h.bf16 %v1316_v0 }
 0x264   : > { %1341 = vst [vmem:[%s210_s10 + $0x8] sm:$0xff] %v1677_v42  ;;  %v1345_v18 = vunpack.c.l.bf16 %v1317_v43  ;;  %v1347_v10 = vunpack.c.h.bf16 %v1317_v43  ;;  %1701 = vmatprep.subr.bf16.mxu1 %v1317_v43 }
 0x265   : > { %1703 = vmatpush1.bf16.xpose.msra.mxu1 %v1316_v0  ;;  %v1423_v17 = vmul.f32 %v1344_v57, %v1344_v57  ;;  %v1425_v20 = vmul.f32 %v1346_v55, %v1346_v55 }
 0x266   : > { %v1307_v1 = vpop.f32.mrb[4].mxu0  ;;  %v1424_v59 = vmul.f32 %v1345_v18, %v1345_v18  ;;  %v1426_v2 = vmul.f32 %v1347_v10, %v1347_v10 }
 0x267   : > { %v1309_v44 = vpop.f32.mrb[5].mxu0  ;;  %v1710_v22 = vpack.c.bf16 %v1425_v20, %v1423_v17 }
 0x268   : > { %v1678_v39 = vpack.c.bf16 %v1309_v44, %v1307_v1  ;;  %v1311_v40 = vpop.f32.mrb[6].mxu0  ;;  %v1708_v19 = vpack.c.bf16 %v1426_v2, %v1424_v59 }
 0x269   : > { %v1318_v37 = vpack.c.bf16 %v1311_v40, %v1307_v1  ;;  %v1313_v49 = vpop.f32.mrb[7].mxu0 }
 0x26a   : > { %1342 = vst [vmem:[%s210_s10 + $0x10] sm:$0xff] %v1678_v39  ;;  %v1319_v41 = vpack.c.bf16 %v1313_v49, %v1309_v44  ;;  %v1679_v52 = vpack.c.bf16 %v1313_v49, %v1311_v40 }
 0x26b   : > { %v1348_v5 = vunpack.c.l.bf16 %v1318_v37  ;;  %v1350_v30 = vunpack.c.h.bf16 %v1318_v37 }
 0x26c   : > { %1343 = vst [vmem:[%s210_s10 + $0x18] sm:$0xff] %v1679_v52  ;;  %v1349_v3 = vunpack.c.l.bf16 %v1319_v41  ;;  %v1351_v13 = vunpack.c.h.bf16 %v1319_v41  ;;  %1705 = vmatprep.subr.bf16.mxu1 %v1319_v41 }
 0x26d   : > { %1707 = vmatpush1.bf16.xpose.msra.mxu1 %v1318_v37  ;;  %v1427_v35 = vmul.f32 %v1348_v5, %v1348_v5  ;;  %v1429_v24 = vmul.f32 %v1350_v30, %v1350_v30 }
 0x26e   : > { %1709 = vmatprep.subr.bf16.mxu1 %v1708_v19  ;;  %v1428_v14 = vmul.f32 %v1349_v3, %v1349_v3  ;;  %v1430_v21 = vmul.f32 %v1351_v13, %v1351_v13 }
 0x26f   : > { %v1714_v25 = vpack.c.bf16 %v1429_v24, %v1427_v35 }
 0x270   : > { %v1712_v23 = vpack.c.bf16 %v1430_v21, %v1428_v14 }
 0x274   : > { %1417 = vmatmul.mubr.f32.vlgmr.msra.gmra.mrb[0].mxu1 %v1797_v9 }
 0x275   : > { %1711 = vmatpush1.bf16.xpose.msra.mxu1 %v1710_v22  ;;  %1495 = vmatprep.mubr.f32.mxu1 %v1797_v9 }
 0x276   : > { %1713 = vmatprep.subr.bf16.mxu1 %v1712_v23 }
 0x27d   : > { %1715 = vmatpush1.bf16.xpose.msra.mxu1 %v1714_v25 }
 0x284   : > { %1496 = vmatmul.mubr.f32.vlgmr.msra.gmra.mrb[2].mxu1 %v1797_v9 }
 0x347   : > { %v1418_v27 = vpop.f32.mrb[0].mxu1 }
 0x348   : > { %1422 = vst.msk [vmem:[%s214_s14] sm:$0xff] %vm1177_vm9, %v1418_v27  ;;  %v1420_v29 = vpop.f32.mrb[1].mxu1 }
 0x357   : > { %v1497_v31 = vpop.f32.mrb[2].mxu1 }
 0x358   : > { %1501 = vst.msk [vmem:[%s218_s19] sm:$0xff] %vm1177_vm9, %v1497_v31  ;;  %v1499_v32 = vpop.f32.mrb[3].mxu1 }
 0x359 PF: > { %s15_s15 = sadd.s32 1, %s1787_s15  }
 0x35a   : > { %p12_p4 = scmp.ge.s32.totalorder %s15_s15, 4  }
 0x35c   :  { %14 = sbr.rel (!%p12_p4) target bundleno = 1 (0x1), region = 82 }

</bundles_post_ra>
